<compile_context>
chip_gen: v7x
topology: tpu7x:2x2x1
jax: 0.10.0
libtpu: 0.0.40
codegen_flags: <defaults>
</compile_context>

<pallas_src>
import functools

import jax
import jax.numpy as jnp
from jax.experimental import pallas as pl
from jax.experimental.pallas import tpu as pltpu


# -----------------------------------------------------------------------------
# Pallas kernel: multi-tap matmul + bias (+ optional ReLU), fp32 accumulation.
#
# A KxK stride-1 conv on a zero-padded, spatially-flattened NHWC map is exactly
#     out[p, :] = sum_t  x_flat[p + off_t, :] @ W[t]   (+ bias),  off_t = dy*Wp + dx
# The padded image is read into VMEM ONCE per grid step; the taps are shifted slices of
# that block, so there is no im2col blow-up and no kh*kw re-read of the input from HBM.
# -----------------------------------------------------------------------------
def _multi_tap_matmul_kernel(tap_offsets, p_out, relu, x_ref, w_ref, b_ref, o_ref):
    # x_ref : (1, Pin, Cin)    bf16 flattened padded image
    # w_ref : (T, Cin, Cout)   bf16 per-tap weights (resident across the grid)
    # b_ref : (1, Cout)        f32 bias
    # o_ref : (1, p_out, Cout) output (bf16 intermediate or f32 head output)
    x = x_ref[0]
    off0 = tap_offsets[0]
    acc = jnp.dot(x[off0:off0 + p_out, :], w_ref[0],
                  preferred_element_type=jnp.float32)
    for t in range(1, len(tap_offsets)):
        off = tap_offsets[t]
        acc = acc + jnp.dot(x[off:off + p_out, :], w_ref[t],
                            preferred_element_type=jnp.float32)
    acc = acc + b_ref[...]
    if relu:
        acc = jnp.maximum(acc, 0.0)
    o_ref[0] = acc.astype(o_ref.dtype)


def _pallas_multi_tap_matmul(x_flat, w_taps, b, tap_offsets, p_out, relu, out_dtype):
    """x_flat: (B, Pin, Cin) bf16, w_taps: (T, Cin, Cout) bf16, b: (1, Cout) f32."""
    B, Pin, Cin = x_flat.shape
    T, _, Cout = w_taps.shape
    kernel = functools.partial(_multi_tap_matmul_kernel, tuple(tap_offsets), p_out, relu)
    return pl.pallas_call(
        kernel,
        out_shape=jax.ShapeDtypeStruct((B, p_out, Cout), out_dtype),
        grid=(B,),
        in_specs=[
            pl.BlockSpec((1, Pin, Cin), lambda n: (n, 0, 0)),
            pl.BlockSpec((T, Cin, Cout), lambda n: (0, 0, 0)),   # same block every step
            pl.BlockSpec((1, Cout), lambda n: (0, 0)),
        ],
        out_specs=pl.BlockSpec((1, p_out, Cout), lambda n: (n, 0, 0)),
        compiler_params=pltpu.CompilerParams(dimension_semantics=("parallel",)),
    )(x_flat, w_taps, b)


# -----------------------------------------------------------------------------
# Conv wrappers (pure-JAX layout glue only; all FLOPs run in the Pallas kernel).
# -----------------------------------------------------------------------------
def conv2d_shift(x_nhwc, w_hwio, b, padding, relu=False, out_dtype=jnp.bfloat16):
    """Stride-1 KxK conv. padding = ((pad_top, pad_bottom), (pad_left, pad_right))."""
    N, H, W, Cin = x_nhwc.shape
    kh, kw, _, Cout = w_hwio.shape
    (pt, pb), (plft, prgt) = padding
    Hp0 = H + pt + pb
    Wp = W + plft + prgt
    Ho = Hp0 - kh + 1
    Wo = Wp - kw + 1
    extra = 1 if kw > 1 else 0          # one extra zero row keeps the last tap slice in-bounds
    xp = jnp.pad(x_nhwc, ((0, 0), (pt, pb + extra), (plft, prgt), (0, 0)))
    x_flat = xp.reshape(N, (Hp0 + extra) * Wp, Cin).astype(jnp.bfloat16)
    w_taps = w_hwio.reshape(kh * kw, Cin, Cout).astype(jnp.bfloat16)
    tap_offsets = [dy * Wp + dx for dy in range(kh) for dx in range(kw)]
    p_out = Ho * Wp                      # Wp cols per output row; last kw-1 are discarded
    out = _pallas_multi_tap_matmul(x_flat, w_taps,
                                   b.reshape(1, Cout).astype(jnp.float32),
                                   tap_offsets, p_out, relu, out_dtype)
    return out.reshape(N, Ho, Wp, Cout)[:, :, :Wo, :]


def conv2d_stride2(x_nhwc, w_hwio, b, relu=False, out_dtype=jnp.bfloat16):
    """3x3 / stride-2 / pad-1 conv as space-to-depth + 2x2 stride-1 conv (same kernel)."""
    N, H, W, C = x_nhwc.shape
    kh, kw, _, Cout = w_hwio.shape
    assert (kh, kw) == (3, 3) and H % 2 == 0 and W % 2 == 0
    y = x_nhwc.reshape(N, H // 2, 2, W // 2, 2, C)
    y = y.transpose(0, 1, 3, 2, 4, 5).reshape(N, H // 2, W // 2, 4 * C)
    # Re-express the 3x3 stride-2 weights as a 2x2 kernel over the space-to-depth channels.
    w2 = jnp.zeros((2, 2, 4 * C, Cout), w_hwio.dtype)
    for db in range(2):
        for dw in range(2):
            for ph in range(2):
                for pw in range(2):
                    dy, dx = 2 * db + ph - 1, 2 * dw + pw - 1
                    if 0 <= dy < 3 and 0 <= dx < 3:
                        cs = (ph * 2 + pw) * C
                        w2 = w2.at[db, dw, cs:cs + C, :].set(w_hwio[dy, dx])
    return conv2d_shift(y, w2, b, padding=((1, 0), (1, 0)), relu=relu, out_dtype=out_dtype)


# -----------------------------------------------------------------------------
# Deterministic parameter construction (synthetic; no checkpoint loading).
# -----------------------------------------------------------------------------
def _conv_init(key, kh, kw, cin, cout):
    fan_in = kh * kw * cin
    w = jax.random.normal(key, (kh, kw, cin, cout), jnp.float32) / jnp.sqrt(float(fan_in))
    b = jnp.zeros((cout,), jnp.float32)
    return {"w": w, "b": b}


class GeneralizedRCNNPallas:
    """JAX/Pallas re-implementation of the GeneralizedRCNN forward (inference path)."""

    def __init__(self, key, in_channels=3, backbone_channels=32, num_classes=4):
        k1, k2, k3, k4, k5, k6 = jax.random.split(key, 6)
        self.backbone_out_channels = backbone_channels
        self.num_classes = num_classes
        # backbone: two stride-2 3x3 convs -> 2 pyramid levels. Stem Cin zero-padded to a
        # multiple of 4 so every contraction dim is sublane-friendly after space-to-depth.
        cin_pad = in_channels + ((-in_channels) % 4)
        stem = _conv_init(k1, 3, 3, in_channels, backbone_channels)
        stem = {"w": jnp.pad(stem["w"], ((0, 0), (0, 0), (0, cin_pad - in_channels), (0, 0))),
                "b": stem["b"]}
        self.in_channels = in_channels
        self.in_channels_padded = cin_pad
        self.backbone = {
            "stem": stem,
            "down": _conv_init(k2, 3, 3, backbone_channels, backbone_channels),
        }
        # rpn (FCOS head), shared across levels. TODO(synk): real FCOS uses a 4-deep tower
        # with GroupNorm; a single tower conv is used here for the synthetic kernel.
        tower = _conv_init(k3, 3, 3, backbone_channels, backbone_channels)
        cls_h = _conv_init(k4, 3, 3, backbone_channels, num_classes)
        box_h = _conv_init(k5, 3, 3, backbone_channels, 4)
        ctr_h = _conv_init(k6, 3, 3, backbone_channels, 1)
        # Fuse cls / bbox / centerness into ONE conv; pad Cout to 128 for lane-dense stores.
        head_w = jnp.concatenate([cls_h["w"], box_h["w"], ctr_h["w"]], axis=-1)
        head_b = jnp.concatenate([cls_h["b"], box_h["b"], ctr_h["b"]], axis=-1)
        self.head_channels = head_w.shape[-1]                      # num_classes + 4 + 1
        cpad = (-self.head_channels) % 128
        self.rpn = {
            "tower": tower,
            "head_w": jnp.pad(head_w, ((0, 0), (0, 0), (0, 0), (0, cpad))),
            "head_b": jnp.pad(head_b, ((0, cpad),)),
            "scales": jnp.asarray([1.0, 2.0], jnp.float32),        # one learnable scale / level
        }
        self.roi_heads = None  # RPN_ONLY (FCOS) configuration

    # ------------------------------------------------------------------ backbone
    def backbone_forward(self, images_nhwc):
        x = images_nhwc
        if self.in_channels_padded != self.in_channels:
            x = jnp.pad(x, ((0, 0), (0, 0), (0, 0),
                            (0, self.in_channels_padded - self.in_channels)))
        c1 = conv2d_stride2(x, self.backbone["stem"]["w"], self.backbone["stem"]["b"],
                            relu=True, out_dtype=jnp.bfloat16)      # (N, H/2, W/2, C)
        c2 = conv2d_stride2(c1, self.backbone["down"]["w"], self.backbone["down"]["b"],
                            relu=True, out_dtype=jnp.bfloat16)      # (N, H/4, W/4, C)
        return [c1, c2]

    # ---------------------------------------------------- score map reshaping (glue)
    def score_maps_to_images_shape(self, images_nchw, score_maps):
        n, _, h, w = images_nchw.shape
        padded = []
        for img in score_maps:                    # img: (c<=1, h_i<=h, w_i<=w)
            c_i, h_i, w_i = img.shape
            pad_img = jnp.zeros((1, h, w), jnp.float32)
            pad_img = pad_img.at[:c_i, :h_i, :w_i].set(img.astype(jnp.float32))
            padded.append(pad_img)
        return jnp.stack(padded, axis=0)          # (N, 1, H, W)

    def _trans_tensor_shape(self, sm, expected_h, expected_w):
        # Mirrors trans_tensor_shape: scale to [0,255], truncate to uint8,
        # nearest-neighbour resize (cv2 INTER_NEAREST index rule), rescale, round, int.
        max_v = jnp.maximum(sm.max(), 1e-6)       # guard against all-zero maps (NaN fix)
        q = jnp.floor(sm * 255.0 / max_v).astype(jnp.uint8)          # (1, H, W)
        H, W = sm.shape[-2:]
        ys = jnp.floor(jnp.arange(expected_h) * (H / expected_h)).astype(jnp.int32)
        xs = jnp.floor(jnp.arange(expected_w) * (W / expected_w)).astype(jnp.int32)
        r = q[:, ys][:, :, xs].astype(jnp.float32)                   # (1, h_f, w_f)
        return jnp.round(r * max_v / 255.0).astype(jnp.int32)

    def score_maps_to_features_shape(self, features, score_maps):
        out = []
        for feat in features:                     # feat: (N, h_f, w_f, C) NHWC
            n, h_f, w_f, _ = feat.shape
            per_image = [self._trans_tensor_shape(score_maps[j], h_f, w_f) for j in range(n)]
            out.append(jnp.stack(per_image, axis=0))   # (N, 1, h_f, w_f)
        return out

    # ------------------------------------------------------------------ rpn (FCOS head)
    def rpn_forward(self, features, score_maps_list):
        N = int(features[0].shape[0])
        Hc = max(int(f.shape[1]) for f in features)
        Wc = max(int(f.shape[2]) for f in features)
        # Pack all pyramid levels onto a common zero canvas so the shared tower + fused
        # head run as ONE pallas_call each for the whole pyramid.
        canvases, masks = [], []
        for f in features:
            h, w = int(f.shape[1]), int(f.shape[2])
            canvases.append(jnp.pad(f, ((0, 0), (0, Hc - h), (0, Wc - w), (0, 0))))
            m = jnp.zeros((1, Hc, Wc, 1), jnp.bfloat16).at[:, :h, :w, :].set(1.0)
            masks.append(jnp.broadcast_to(m, (N, Hc, Wc, 1)))
        x = jnp.concatenate(canvases, axis=0)                        # (L*N, Hc, Wc, C)
        mask = jnp.concatenate(masks, axis=0)

        t = conv2d_shift(x, self.rpn["tower"]["w"], self.rpn["tower"]["b"],
                         padding=((1, 1), (1, 1)), relu=True, out_dtype=jnp.bfloat16)
        t = t * mask   # restore the zero ring outside each level before the head conv
        head = conv2d_shift(t, self.rpn["head_w"], self.rpn["head_b"],
                            padding=((1, 1), (1, 1)), relu=False, out_dtype=jnp.float32)

        nc = self.num_classes
        cls_logits, bbox_reg, centerness = [], [], []
        for lvl, f in enumerate(features):
            h, w = int(f.shape[1]), int(f.shape[2])
            packed = head[lvl * N:(lvl + 1) * N, :h, :w, :self.head_channels]
            packed = jnp.transpose(packed, (0, 3, 1, 2))   # single NHWC->NCHW per level
            cls_logits.append(packed[:, :nc])
            bbox_reg.append(packed[:, nc:nc + 4] * self.rpn["scales"][lvl])
            centerness.append(packed[:, nc + 4:nc + 5])
        # TODO(synk): score_maps_list is consumed inside the modified FCOS loss/selector;
        # that fusion is model-specific, so the resized maps are passed through unchanged.
        proposals = {
            "cls_logits": cls_logits,
            "bbox_reg": bbox_reg,
            "centerness": centerness,
            "score_maps": score_maps_list,
        }
        proposal_losses = {}
        return proposals, proposal_losses

    # ------------------------------------------------------------------ forward
    def forward(self, images_nchw, targets=None, score_maps=None):
        score_maps = self.score_maps_to_images_shape(images_nchw, score_maps)
        images_nhwc = jnp.transpose(images_nchw, (0, 2, 3, 1))        # NCHW -> NHWC
        features = self.backbone_forward(images_nhwc)
        score_maps_list = self.score_maps_to_features_shape(features, score_maps)
        proposals, _proposal_losses = self.rpn_forward(features, score_maps_list)
        # roi_heads is None (RPN_ONLY / FCOS) -> result = proposals (inference path).
        result = proposals
        return result


# -----------------------------------------------------------------------------
# Pure-JAX reference check for the Pallas conv paths (bf16 inputs, fp32 accumulate).
# -----------------------------------------------------------------------------
def _self_check_convs():
    k = jax.random.PRNGKey(42)
    kx, kw_ = jax.random.split(k)
    x = jax.random.normal(kx, (2, 8, 8, 16), jnp.float32)
    w = jax.random.normal(kw_, (3, 3, 16, 32), jnp.float32) * 0.1
    b = jax.random.normal(jax.random.PRNGKey(7), (32,), jnp.float32) * 0.1
    xb = x.astype(jnp.bfloat16).astype(jnp.float32)
    wb = w.astype(jnp.bfloat16).astype(jnp.float32)
    dn = ("NHWC", "HWIO", "NHWC")
    got1 = conv2d_shift(x, w, b, padding=((1, 1), (1, 1)), relu=False, out_dtype=jnp.float32)
    ref1 = jax.lax.conv_general_dilated(xb, wb, (1, 1), ((1, 1), (1, 1)),
                                        dimension_numbers=dn) + b
    got2 = conv2d_stride2(x, w, b, relu=False, out_dtype=jnp.float32)
    ref2 = jax.lax.conv_general_dilated(xb, wb, (2, 2), ((1, 1), (1, 1)),
                                        dimension_numbers=dn) + b
    assert jnp.max(jnp.abs(got1 - ref1)) < 5e-2, "stride-1 shift-conv mismatch"
    assert jnp.max(jnp.abs(got2 - ref2)) < 5e-2, "stride-2 (space-to-depth) conv mismatch"


if __name__ == "__main__":
    _self_check_convs()

    key = jax.random.PRNGKey(0)
    k_model, k_img, k_sm1, k_sm2 = jax.random.split(key, 4)

    model = GeneralizedRCNNPallas(k_model, in_channels=3, backbone_channels=32, num_classes=4)

    # Small deterministic inputs (batch=2, channels=3, 16x16 images, NCHW like PyTorch).
    images = jax.random.normal(k_img, (2, 3, 16, 16), jnp.float32)
    # Per-image score maps (c=1, variable spatial size < image size), non-negative.
    score_maps = [
        jax.random.uniform(k_sm1, (1, 12, 10), jnp.float32, minval=0.1, maxval=1.0),
        jax.random.uniform(k_sm2, (1, 16, 14), jnp.float32, minval=0.1, maxval=1.0),
    ]

    result = model.forward(images, targets=None, score_maps=score_maps)
    jax.block_until_ready(result)

    # Light sanity checks on shapes (2 pyramid levels: 8x8 and 4x4).
    assert result["cls_logits"][0].shape == (2, 4, 8, 8)
    assert result["cls_logits"][1].shape == (2, 4, 4, 4)
    assert result["bbox_reg"][0].shape == (2, 4, 8, 8)
    assert result["centerness"][1].shape == (2, 1, 4, 4)
    assert result["score_maps"][0].shape == (2, 1, 8, 8)
    assert result["score_maps"][1].shape == (2, 1, 4, 4)

    print("KERNEL_OK")
</pallas_src>

<mosaic_0001>
module attributes {stable_mosaic.version = 11 : i64} {
  func.func @_multi_tap_matmul_kernel(%arg0: i32, %arg1: memref<1x110x16xbf16, #tpu.memory_space<vmem>>, %arg2: memref<9x16x32xbf16, #tpu.memory_space<vmem>>, %arg3: memref<1x32xf32, #tpu.memory_space<vmem>>, %arg4: memref<1x80x32xf32, #tpu.memory_space<vmem>>) attributes {dimension_semantics = [#tpu.dimension_semantics<parallel>], iteration_bounds = array<i64: 2>, scalar_prefetch = 0 : i64, scratch_operands = 0 : i64, tpu.core_type = #tpu.core_type<tc>, window_params = [{transform_indices = @transform_0, window_bounds = array<i64: 1, 110, 16>}, {pipeline_mode = #tpu.pipeline_mode<synchronous>, transform_indices = @transform_1, window_bounds = array<i64: 9, 16, 32>}, {pipeline_mode = #tpu.pipeline_mode<synchronous>, transform_indices = @transform_2, window_bounds = array<i64: 1, 32>}, {transform_indices = @transform_3, window_bounds = array<i64: 1, 80, 32>}]} {
    %c0 = arith.constant 0 : index
    %c0_0 = arith.constant 0 : index
    %c0_1 = arith.constant 0 : index
    %0 = vector.load %arg1[%c0, %c0_0, %c0_1] : memref<1x110x16xbf16, #tpu.memory_space<vmem>>, vector<1x110x16xbf16>
    %1 = vector.shape_cast %0 : vector<1x110x16xbf16> to vector<110x16xbf16>
    %2 = vector.extract_strided_slice %1 {offsets = [0, 0], sizes = [80, 16], strides = [1, 1]} : vector<110x16xbf16> to vector<80x16xbf16>
    %c0_2 = arith.constant 0 : index
    %c0_3 = arith.constant 0 : index
    %c0_4 = arith.constant 0 : index
    %3 = vector.load %arg2[%c0_2, %c0_3, %c0_4] : memref<9x16x32xbf16, #tpu.memory_space<vmem>>, vector<1x16x32xbf16>
    %4 = vector.shape_cast %3 : vector<1x16x32xbf16> to vector<16x32xbf16>
    %cst = arith.constant dense<0.000000e+00> : vector<80x32xf32>
    %5 = tpu.matmul %2, %4, %cst {dimension_numbers = #tpu.dot_dimension_numbers<[1], [0], [0], [1], [0, 0, 1, 1], [], []>} : vector<80x16xbf16>, vector<16x32xbf16>, vector<80x32xf32> -> vector<80x32xf32>
    %6 = vector.extract_strided_slice %1 {offsets = [1, 0], sizes = [80, 16], strides = [1, 1]} : vector<110x16xbf16> to vector<80x16xbf16>
    %c1 = arith.constant 1 : index
    %c0_5 = arith.constant 0 : index
    %c0_6 = arith.constant 0 : index
    %7 = vector.load %arg2[%c1, %c0_5, %c0_6] : memref<9x16x32xbf16, #tpu.memory_space<vmem>>, vector<1x16x32xbf16>
    %8 = vector.shape_cast %7 : vector<1x16x32xbf16> to vector<16x32xbf16>
    %cst_7 = arith.constant dense<0.000000e+00> : vector<80x32xf32>
    %9 = tpu.matmul %6, %8, %cst_7 {dimension_numbers = #tpu.dot_dimension_numbers<[1], [0], [0], [1], [0, 0, 1, 1], [], []>} : vector<80x16xbf16>, vector<16x32xbf16>, vector<80x32xf32> -> vector<80x32xf32>
    %10 = arith.addf %5, %9 : vector<80x32xf32>
    %11 = vector.extract_strided_slice %1 {offsets = [2, 0], sizes = [80, 16], strides = [1, 1]} : vector<110x16xbf16> to vector<80x16xbf16>
    %c2 = arith.constant 2 : index
    %c0_8 = arith.constant 0 : index
    %c0_9 = arith.constant 0 : index
    %12 = vector.load %arg2[%c2, %c0_8, %c0_9] : memref<9x16x32xbf16, #tpu.memory_space<vmem>>, vector<1x16x32xbf16>
    %13 = vector.shape_cast %12 : vector<1x16x32xbf16> to vector<16x32xbf16>
    %cst_10 = arith.constant dense<0.000000e+00> : vector<80x32xf32>
    %14 = tpu.matmul %11, %13, %cst_10 {dimension_numbers = #tpu.dot_dimension_numbers<[1], [0], [0], [1], [0, 0, 1, 1], [], []>} : vector<80x16xbf16>, vector<16x32xbf16>, vector<80x32xf32> -> vector<80x32xf32>
    %15 = arith.addf %10, %14 : vector<80x32xf32>
    %16 = vector.extract_strided_slice %1 {offsets = [10, 0], sizes = [80, 16], strides = [1, 1]} : vector<110x16xbf16> to vector<80x16xbf16>
    %c3 = arith.constant 3 : index
    %c0_11 = arith.constant 0 : index
    %c0_12 = arith.constant 0 : index
    %17 = vector.load %arg2[%c3, %c0_11, %c0_12] : memref<9x16x32xbf16, #tpu.memory_space<vmem>>, vector<1x16x32xbf16>
    %18 = vector.shape_cast %17 : vector<1x16x32xbf16> to vector<16x32xbf16>
    %cst_13 = arith.constant dense<0.000000e+00> : vector<80x32xf32>
    %19 = tpu.matmul %16, %18, %cst_13 {dimension_numbers = #tpu.dot_dimension_numbers<[1], [0], [0], [1], [0, 0, 1, 1], [], []>} : vector<80x16xbf16>, vector<16x32xbf16>, vector<80x32xf32> -> vector<80x32xf32>
    %20 = arith.addf %15, %19 : vector<80x32xf32>
    %21 = vector.extract_strided_slice %1 {offsets = [11, 0], sizes = [80, 16], strides = [1, 1]} : vector<110x16xbf16> to vector<80x16xbf16>
    %c4 = arith.constant 4 : index
    %c0_14 = arith.constant 0 : index
    %c0_15 = arith.constant 0 : index
    %22 = vector.load %arg2[%c4, %c0_14, %c0_15] : memref<9x16x32xbf16, #tpu.memory_space<vmem>>, vector<1x16x32xbf16>
    %23 = vector.shape_cast %22 : vector<1x16x32xbf16> to vector<16x32xbf16>
    %cst_16 = arith.constant dense<0.000000e+00> : vector<80x32xf32>
    %24 = tpu.matmul %21, %23, %cst_16 {dimension_numbers = #tpu.dot_dimension_numbers<[1], [0], [0], [1], [0, 0, 1, 1], [], []>} : vector<80x16xbf16>, vector<16x32xbf16>, vector<80x32xf32> -> vector<80x32xf32>
    %25 = arith.addf %20, %24 : vector<80x32xf32>
    %26 = vector.extract_strided_slice %1 {offsets = [12, 0], sizes = [80, 16], strides = [1, 1]} : vector<110x16xbf16> to vector<80x16xbf16>
    %c5 = arith.constant 5 : index
    %c0_17 = arith.constant 0 : index
    %c0_18 = arith.constant 0 : index
    %27 = vector.load %arg2[%c5, %c0_17, %c0_18] : memref<9x16x32xbf16, #tpu.memory_space<vmem>>, vector<1x16x32xbf16>
    %28 = vector.shape_cast %27 : vector<1x16x32xbf16> to vector<16x32xbf16>
    %cst_19 = arith.constant dense<0.000000e+00> : vector<80x32xf32>
    %29 = tpu.matmul %26, %28, %cst_19 {dimension_numbers = #tpu.dot_dimension_numbers<[1], [0], [0], [1], [0, 0, 1, 1], [], []>} : vector<80x16xbf16>, vector<16x32xbf16>, vector<80x32xf32> -> vector<80x32xf32>
    %30 = arith.addf %25, %29 : vector<80x32xf32>
    %31 = vector.extract_strided_slice %1 {offsets = [20, 0], sizes = [80, 16], strides = [1, 1]} : vector<110x16xbf16> to vector<80x16xbf16>
    %c6 = arith.constant 6 : index
    %c0_20 = arith.constant 0 : index
    %c0_21 = arith.constant 0 : index
    %32 = vector.load %arg2[%c6, %c0_20, %c0_21] : memref<9x16x32xbf16, #tpu.memory_space<vmem>>, vector<1x16x32xbf16>
    %33 = vector.shape_cast %32 : vector<1x16x32xbf16> to vector<16x32xbf16>
    %cst_22 = arith.constant dense<0.000000e+00> : vector<80x32xf32>
    %34 = tpu.matmul %31, %33, %cst_22 {dimension_numbers = #tpu.dot_dimension_numbers<[1], [0], [0], [1], [0, 0, 1, 1], [], []>} : vector<80x16xbf16>, vector<16x32xbf16>, vector<80x32xf32> -> vector<80x32xf32>
    %35 = arith.addf %30, %34 : vector<80x32xf32>
    %36 = vector.extract_strided_slice %1 {offsets = [21, 0], sizes = [80, 16], strides = [1, 1]} : vector<110x16xbf16> to vector<80x16xbf16>
    %c7 = arith.constant 7 : index
    %c0_23 = arith.constant 0 : index
    %c0_24 = arith.constant 0 : index
    %37 = vector.load %arg2[%c7, %c0_23, %c0_24] : memref<9x16x32xbf16, #tpu.memory_space<vmem>>, vector<1x16x32xbf16>
    %38 = vector.shape_cast %37 : vector<1x16x32xbf16> to vector<16x32xbf16>
    %cst_25 = arith.constant dense<0.000000e+00> : vector<80x32xf32>
    %39 = tpu.matmul %36, %38, %cst_25 {dimension_numbers = #tpu.dot_dimension_numbers<[1], [0], [0], [1], [0, 0, 1, 1], [], []>} : vector<80x16xbf16>, vector<16x32xbf16>, vector<80x32xf32> -> vector<80x32xf32>
    %40 = arith.addf %35, %39 : vector<80x32xf32>
    %41 = vector.extract_strided_slice %1 {offsets = [22, 0], sizes = [80, 16], strides = [1, 1]} : vector<110x16xbf16> to vector<80x16xbf16>
    %c8 = arith.constant 8 : index
    %c0_26 = arith.constant 0 : index
    %c0_27 = arith.constant 0 : index
    %42 = vector.load %arg2[%c8, %c0_26, %c0_27] : memref<9x16x32xbf16, #tpu.memory_space<vmem>>, vector<1x16x32xbf16>
    %43 = vector.shape_cast %42 : vector<1x16x32xbf16> to vector<16x32xbf16>
    %cst_28 = arith.constant dense<0.000000e+00> : vector<80x32xf32>
    %44 = tpu.matmul %41, %43, %cst_28 {dimension_numbers = #tpu.dot_dimension_numbers<[1], [0], [0], [1], [0, 0, 1, 1], [], []>} : vector<80x16xbf16>, vector<16x32xbf16>, vector<80x32xf32> -> vector<80x32xf32>
    %45 = arith.addf %40, %44 : vector<80x32xf32>
    %c0_29 = arith.constant 0 : index
    %c0_30 = arith.constant 0 : index
    %46 = vector.load %arg3[%c0_29, %c0_30] : memref<1x32xf32, #tpu.memory_space<vmem>>, vector<1x32xf32>
    %47 = vector.broadcast %46 : vector<1x32xf32> to vector<80x32xf32>
    %48 = arith.addf %45, %47 : vector<80x32xf32>
    %c0_31 = arith.constant 0 : index
    %c0_32 = arith.constant 0 : index
    %c0_33 = arith.constant 0 : index
    %49 = vector.load %arg4[%c0_31, %c0_32, %c0_33] : memref<1x80x32xf32, #tpu.memory_space<vmem>>, vector<1x80x32xf32>
    %50 = vector.shape_cast %49 : vector<1x80x32xf32> to vector<80x32xf32>
    %51 = vector.shape_cast %48 : vector<80x32xf32> to vector<1x80x32xf32>
    tpu.vector_store %arg4[%c0_31, %c0_32, %c0_33], %51 {strides = array<i32>} : memref<1x80x32xf32, #tpu.memory_space<vmem>>, vector<1x80x32xf32>,
    return
  }
  func.func @transform_0(%arg0: i32) -> (i32, i32, i32) {
    %c0_i32 = arith.constant 0 : i32
    %c0_i32_0 = arith.constant 0 : i32
    %c0_i32_1 = arith.constant 0 : i32
    return %arg0, %c0_i32, %c0_i32_0 : i32, i32, i32
  }
  func.func @transform_1(%arg0: i32) -> (i32, i32, i32) {
    %c0_i32 = arith.constant 0 : i32
    %c0_i32_0 = arith.constant 0 : i32
    %c0_i32_1 = arith.constant 0 : i32
    %c0_i32_2 = arith.constant 0 : i32
    return %c0_i32, %c0_i32_0, %c0_i32_1 : i32, i32, i32
  }
  func.func @transform_2(%arg0: i32) -> (i32, i32) {
    %c0_i32 = arith.constant 0 : i32
    %c0_i32_0 = arith.constant 0 : i32
    %c0_i32_1 = arith.constant 0 : i32
    return %c0_i32, %c0_i32_0 : i32, i32
  }
  func.func @transform_3(%arg0: i32) -> (i32, i32, i32) {
    %c0_i32 = arith.constant 0 : i32
    %c0_i32_0 = arith.constant 0 : i32
    %c0_i32_1 = arith.constant 0 : i32
    return %arg0, %c0_i32, %c0_i32_0 : i32, i32, i32
  }
}

</mosaic_0001>

<bundles_post_ra>
// kernel: tpu_custom_call.1
= control target key start
LH: loop header
LB: loop body
LE: loop exit
PB: predicated region body
PF: predicated region fallthrough
CT: control target
= control target key end

     0   :  { %s1850_s12 = smov 0   ;;  %s2346_s0 = inlined_call_operand.vmem [shape: bf16[2,110,16], index: 0, kind: input, shape index: {}]   ;;  %s2347_s1 = inlined_call_operand.vmem [shape: bf16[9,16,32], index: 1, kind: input, shape index: {}]   ;;  %s2348_s2 = inlined_call_operand.vmem [shape: f32[1,32], index: 2, kind: input, shape index: {}]   ;;  %s2349_s3 = inlined_call_operand.vmem [shape: f32[2,80,32], index: 3, kind: output, shape index: {}]  }
   0x1 LB: > { %s1437_s13 = sadd.s32 4294967295, %s1826_s12   ;;  %p1441_p0 = scmp.ge.s32.totalorder %s1826_s12, 1  ;;  %s1826_s12 = sphi %s1850_s12, %s13_s12  }
   0x2   : > { %p137_p1 = scmp.lt.s32.totalorder %s1826_s12, 3 }
   0x4   : > { %p138_p2 = pnand %p1441_p0, %p137_p1 }
   0x5   : > { %v1797_v0 = vld [vmem:[%s2347_s1 + $0x8] sm:$0xff] (!%p138_p2)   ;;  %v1828_v1 = vmov (!%p138_p2), 0.0   ;;  %p161_p3 = scmp.lt.s32.totalorder (!%p138_p2), %s1437_s13, 1  ;;  %vm1829_vm0 = vmmov (!%p138_p2), 0   ;;  %vm218_vm1 = vsmask.f32 (!%p138_p2), 7424 }
   0x6   : > { %141 = sbr.rel (%p138_p2) target bundleno = 422 (0x1a6), region = 32  ;;  %1585 = vmatprep.subr.bf16.mxu0 (!%p138_p2), %v1828_v1  ;;  %1783 = vmatprep.subr.bf16.mxu1 (!%p138_p2), %v1828_v1  ;;  %vm269_vm2 = vcmask (!%p138_p2), 130048   ;;  %v1803_v30 = vld [vmem:[%s2347_s1 + $0x10] sm:$0xff] (!%p138_p2)   ;;  %v1804_v34 = vld [vmem:[%s2347_s1] sm:$0xff] (!%p138_p2)   ;;  %vm450_vm3 = vcmask (!%p138_p2), 1046528   ;;  %vm856_vm5 = vcmask (!%p138_p2), 1045504  }
   0x7   : > { %1586 = vmatpush3.bf16.msra.mxu0 (!%p138_p2), %v1797_v0  ;;  %1784 = vmatpush3.bf16.msra.mxu1 (!%p138_p2), %v1797_v0  ;;  %vm695_vm4 = vsmask.f32 (!%p138_p2), 6400  ;;  %vm1097_vm6 = vsmask.f32 (!%p138_p2), 5376  ;;  %vm1238_vm7 = vcmask (!%p138_p2), 1044480   ;;  %vm1371_vm8 = vcmask (!%p138_p2), 261120  }
   0x8   : > { %1587 = vmatprep.mubr.msk.bf16.mxu0 (!%p138_p2), %vm1829_vm0, %v1828_v1  ;;  %1599 = vmatprep.mubr.msk.bf16.mxu1 (!%p138_p2), %vm1829_vm0, %v1828_v1 }
   0x9   : > { %1629 = vmatprep.subr.bf16.mxu0 (!%p138_p2), %v1828_v1  ;;  %1607 = vmatprep.subr.bf16.mxu1 (!%p138_p2), %v1828_v1 }
   0xd   : > { %s2351_s13 = smov (!%p161_p3, %s1437_s13), 1 }
   0xe   : > { %s1785_s16 = smul.u32 56, %s2351_s13 }
   0xf   : > { %s1786_s9 = smul.u32 80, %s2351_s13 }
  0x10   : > { %s1875_s19 = scalar_lea.vmem %s2346_s0, %s1785_s16 }
  0x11   : > { %v172_v2 = vld [vmem:[%s1875_s19] sm:$0xf]  ;;  %v1879_v3 = vld [vmem:[%s1875_s19 + $0x4] sm:$0xf]  ;;  %v1882_v4 = vld [vmem:[%s1875_s19 + $0x8] sm:$0xf]  ;;  %s2308_s16 = scalar_lea.vmem %s2349_s3, %s1786_s9 }
  0x12   : > { %v1885_v5 = vld [vmem:[%s1875_s19 + $0xc] sm:$0xf]  ;;  %v1888_v6 = vcombine.low %v172_v2, %v1879_v3  ;;  %v178_v7 = vld [vmem:[%s1875_s19 + $0x18] sm:$0xf]  ;;  %v179_v8 = vld [vmem:[%s1875_s19 + $0x1c] sm:$0xf] }
  0x13   : > { %v1894_v9 = vcombine.low %v1882_v4, %v1885_v5  ;;  %v180_v10 = vld [vmem:[%s1875_s19 + $0x20] sm:$0xf]  ;;  %v181_v11 = vld [vmem:[%s1875_s19 + $0x24] sm:$0xf]  ;;  %v1898_v12 = vcombine.low %v178_v7, %v179_v8  ;;  %v1901_v13 = vld [vmem:[%s1875_s19 + $0x10] sm:$0xf] }
  0x14   : > { %v220_v14 = vshrl.u32 %v1888_v6, 16  ;;  %v222_v15 = vshll.u32 %v1888_v6, 16  ;;  %v1905_v16 = vcombine.low %v180_v10, %v181_v11  ;;  %v177_v17 = vld [vmem:[%s1875_s19 + $0x14] sm:$0xf]  ;;  %v182_v18 = vld [vmem:[%s1875_s19 + $0x28] sm:$0xf]  ;;  %v1956_v50 = vcombine.low %v179_v8, %v180_v10 }
  0x15   : > { %v227_v19 = vshll.u32 %v1894_v9, 16  ;;  %v243_v20 = vshll.u32 %v1898_v12, 16  ;;  %v247_v21 = vshrl.u32 %v1898_v12, 16  ;;  %v1913_v22 = vcombine.low %v1901_v13, %v177_v17  ;;  %v183_v37 = vld [vmem:[%s1875_s19 + $0x2c] sm:$0xf] }
  0x16   : > { %v224_v23 = vrot.slane %v222_v15, 1  ;;  %v251_v24 = vshll.u32 %v1905_v16, 16  ;;  %v1916_v25 = vcombine.low %v182_v18, %v182_v18  ;;  %v231_v31 = vshrl.u32 %v1894_v9, 16 }
  0x17   : > { %v229_v26 = vrot.slane %v227_v19, 1  ;;  %v245_v27 = vrot.slane %v243_v20, 1  ;;  %v235_v32 = vshll.u32 %v1913_v22, 16  ;;  %v255_v35 = vshrl.u32 %v1905_v16, 16 }
  0x18   : > { %v225_v28 = vor.u32 %v224_v23, %v220_v14  ;;  %v253_v29 = vrot.slane %v251_v24, 1  ;;  %v259_v38 = vshll.u32 %v1916_v25, 16  ;;  %v1936_v39 = vcombine.low %v181_v11, %v182_v18  ;;  %v1809_v23 = vld [vmem:[%s2347_s1 + $0x18] sm:$0xff]  }
  0x19   : > { %v249_v33 = vor.u32 %v247_v21, %v245_v27  ;;  %v1940_v41 = vcombine.low %v182_v18, %v183_v37  ;;  %v233_v42 = vor.u32 %v231_v31, %v229_v26  ;;  %v237_v43 = vrot.slane %v235_v32, 1 }
  0x1a   : > { %v230_v36 = vsel %vm218_vm1, %v225_v28, %v229_v26  ;;  %v257_v44 = vor.u32 %v255_v35, %v253_v29  ;;  %v261_v45 = vrot.slane %v259_v38, 1  ;;  %v239_v47 = vshrl.u32 %v1913_v22, 16 }
  0x1b   : > { %1588 = vmatmul.mubr.msk.bf16.vlgmr.msra.gmra.mrb[0].mxu0 %vm269_vm2, %v230_v36  ;;  %v254_v40 = vsel %vm218_vm1, %v249_v33, %v253_v29  ;;  %v238_v46 = vsel %vm218_vm1, %v233_v42, %v237_v43  ;;  %v1953_v48 = vcombine.low %v177_v17, %v178_v7  ;;  %v1959_v52 = vrot.slane %v227_v19, 3 }
  0x1c   : > { %1600 = vmatmul.mubr.msk.bf16.vlgmr.msra.gmra.mrb[0].mxu1 %vm269_vm2, %v254_v40  ;;  %1630 = vmatpush3.bf16.msra.mxu0 %v1803_v30  ;;  %v262_v49 = vsel %vm218_vm1, %v257_v44, %v261_v45  ;;  %v582_v54 = vrot.slane %v1956_v50, 1  ;;  %v1964_v55 = vrot.slane %v231_v31, 2  ;;  %v241_v56 = vor.u32 %v239_v47, %v237_v43  ;;  %v2011_v45 = vld [vmem:[%s1875_s19 + $0x30] ss:$0 sps:$4 sm:$0xff]  }
  0x1d   : > { %1608 = vmatpush3.bf16.msra.mxu1 %v1804_v34  ;;  %1591 = vmatprep.mubr.msk.bf16.mxu0 %vm1829_vm0, %v1828_v1  ;;  %v714_v51 = vshrl.u32 %v1953_v48, 16  ;;  %v580_v53 = vrot.slane %v1953_v48, 1  ;;  %v717_v57 = vshll.u32 %v1953_v48, 16  ;;  %v584_v58 = vrot.slane %v1936_v39, 1 }
  0x1e   : > { %1603 = vmatprep.mubr.msk.bf16.mxu1 %vm1829_vm0, %v1828_v1  ;;  %1651 = vmatprep.subr.bf16.mxu1 %v1828_v1  ;;  %v1102_v59 = vrot.slane %v235_v32, 3  ;;  %v723_v62 = vshrl.u32 %v1956_v50, 16  ;;  %v726_v2 = vshll.u32 %v1956_v50, 16  ;;  %v1479_v7 = vcombine.low %v183_v37, %v183_v37 }
  0x1f   : > { %1673 = vmatprep.subr.bf16.mxu0 %v1828_v1  ;;  %v1976_v60 = vsel %vm450_vm3, %v580_v53, %v582_v54  ;;  %v716_v61 = vrot.slane %v714_v51, 1  ;;  %v719_v63 = vrot.slane %v717_v57, 2  ;;  %v1980_v0 = vsel %vm450_vm3, %v582_v54, %v584_v58 }
  0x20   : > { %v451_v8 = vrot.slane %v1888_v6, 1  ;;  %v725_v10 = vrot.slane %v723_v62, 1  ;;  %v732_v11 = vshrl.u32 %v1936_v39, 16  ;;  %v735_v14 = vshll.u32 %v1936_v39, 16 }
  0x21   : > { %v246_v15 = vsel %vm218_vm1, %v241_v56, %v245_v27  ;;  %v728_v17 = vrot.slane %v726_v2, 2  ;;  %v586_v18 = vrot.slane %v1479_v7, 1  ;;  %v741_v19 = vshrl.u32 %v1479_v7, 16 }
  0x22   : > { %v452_v26 = vrot.slane %v1894_v9, 1  ;;  %v734_v28 = vrot.slane %v732_v11, 1  ;;  %v737_v29 = vrot.slane %v735_v14, 2  ;;  %v744_v30 = vshll.u32 %v1479_v7, 16 }
  0x23   : > { %1592 = vmatmul.mubr.msk.bf16.gmra.mrb[4].mxu0 %vm269_vm2, %v238_v46  ;;  %v1991_v31 = vor.u32 %v719_v63, %v716_v61  ;;  %v729_v32 = vor.u32 %v728_v17, %v725_v10  ;;  %v1994_v33 = vsel %vm450_vm3, %v584_v58, %v586_v18  ;;  %v743_v27 = vrot.slane %v741_v19, 1  ;;  %v1810_v63 = vld [vmem:[%s2347_s1 + $0x20] sm:$0xff]  }
  0x24   : > { %1604 = vmatmul.mubr.msk.bf16.gmra.mrb[4].mxu1 %vm269_vm2, %v262_v49  ;;  %1595 = vmatprep.mubr.msk.bf16.mxu0 %vm1829_vm0, %v1828_v1  ;;  %v454_v34 = vrot.slane %v1913_v22, 1  ;;  %v738_v36 = vor.u32 %v737_v29, %v734_v28  ;;  %v746_v37 = vrot.slane %v744_v30, 2  ;;  %v860_v38 = vrot.slane %v1953_v48, 2 }
  0x25   : > { %1609 = vmatprep.mubr.msk.bf16.mxu1 %vm1829_vm0, %v1828_v1  ;;  %v2005_v40 = vsel %vm695_vm4, %v1991_v31, %v729_v32  ;;  %v979_v42 = vrot.slane %v1894_v9, 2  ;;  %v980_v43 = vrot.slane %v1913_v22, 2  ;;  %v862_v44 = vrot.slane %v1956_v50, 2 }
  0x26   : > { %v1101_v46 = vrot.slane %v239_v47, 2  ;;  %v747_v49 = vor.u32 %v746_v37, %v743_v27  ;;  %v982_v51 = vrot.slane %v1898_v12, 2  ;;  %v453_v54 = vsel %vm450_vm3, %v451_v8, %v452_v26 }
  0x27   : > { %v2024_v50 = vsel %vm856_vm5, %v979_v42, %v980_v43  ;;  %v2029_v47 = vsel %vm856_vm5, %v860_v38, %v862_v44  ;;  %v864_v56 = vrot.slane %v1936_v39, 2  ;;  %v984_v61 = vrot.slane %v1905_v16, 2 }
  0x28   : > { %v2033_v57 = vsel %vm695_vm4, %v738_v36, %v747_v49  ;;  %v2036_v58 = vsel %vm856_vm5, %v980_v43, %v982_v51  ;;  %v866_v62 = vrot.slane %v1479_v7, 2  ;;  %v986_v8 = vrot.slane %v1940_v41, 2 }
  0x29   : > { %v2043_v2 = vsel %vm856_vm5, %v862_v44, %v864_v56  ;;  %v988_v39 = vrot.slane %v2011_v45, 2  ;;  %v2048_v10 = vsel %vm856_vm5, %v982_v51, %v984_v61  ;;  %v1100_v7 = vor.u32 %v1959_v52, %v1964_v55 }
  0x2a   : > { %v2051_v11 = vsel %vm856_vm5, %v864_v56, %v866_v62  ;;  %v1103_v14 = vor.u32 %v1102_v59, %v1101_v46  ;;  %v1105_v18 = vrot.slane %v247_v21, 2  ;;  %v1106_v19 = vrot.slane %v243_v20, 3 }
  0x2b   : > { %1596 = vmatmul.mubr.msk.bf16.gmra.mrb[8].mxu0 %vm269_vm2, %v246_v15  ;;  %v2056_v15 = vsel %vm856_vm5, %v984_v61, %v986_v8  ;;  %v2059_v17 = vsel %vm856_vm5, %v986_v8, %v988_v39  ;;  %v1239_v52 = vrot.slane %v1894_v9, 3  ;;  %v1240_v55 = vrot.slane %v1913_v22, 3 }
  0x2c   : > { %1610 = vmatmul.mubr.msk.bf16.vlgmr.msra.gmra.mrb[8].mxu1 %vm269_vm2, %v1888_v6  ;;  %1631 = vmatprep.mubr.msk.bf16.mxu0 %vm1829_vm0, %v1828_v1  ;;  %v2016_v6 = vsel %vm695_vm4, %v729_v32, %v738_v36  ;;  %v1107_v59 = vor.u32 %v1106_v19, %v1105_v18  ;;  %v1109_v21 = vrot.slane %v255_v35, 2  ;;  %v1110_v20 = vrot.slane %v251_v24, 3 }
  0x2d   : > { %1652 = vmatpush3.bf16.msra.mxu1 %v1809_v23  ;;  %1613 = vmatprep.mubr.msk.bf16.mxu1 %vm1829_vm0, %v1828_v1  ;;  %v2067_v23 = vsel %vm1097_vm6, %v1100_v7, %v1103_v14  ;;  %v1242_v28 = vrot.slane %v1898_v12, 3  ;;  %v2083_v29 = vsel %vm1238_vm7, %v1239_v52, %v1240_v55  ;;  %v1114_v30 = vshrl.u32 %v1940_v41, 16 }
  0x2e   : > { %1695 = vmatprep.subr.bf16.mxu1 %v1828_v1  ;;  %v1117_v32 = vshll.u32 %v1940_v41, 16  ;;  %v2089_v35 = vsel %vm1097_vm6, %v1103_v14, %v1107_v59  ;;  %v1111_v24 = vor.u32 %v1110_v20, %v1109_v21  ;;  %v455_v42 = vsel %vm450_vm3, %v452_v26, %v454_v34 }
  0x2f   : > { %v2092_v27 = vsel %vm1238_vm7, %v1240_v55, %v1242_v28  ;;  %v1116_v36 = vrot.slane %v1114_v30, 2  ;;  %v1244_v46 = vrot.slane %v1905_v16, 3  ;;  %v1123_v26 = vshrl.u32 %v2011_v45, 16 }
  0x30   : > { %v1119_v37 = vrot.slane %v1117_v32, 3  ;;  %v2100_v43 = vsel %vm1097_vm6, %v1107_v59, %v1111_v24  ;;  %v1246_v8 = vrot.slane %v1940_v41, 3  ;;  %v1474_v18 = vcombine.low %v1879_v3, %v1882_v4 }
  0x31   : > { %v2108_v51 = vsel %vm1238_vm7, %v1242_v28, %v1244_v46  ;;  %v1125_v56 = vrot.slane %v1123_v26, 2  ;;  %v460_v19 = vrot.slane %v1916_v25, 1  ;;  %v1812_v28 = vld [vmem:[%s2347_s1 + $0x28] sm:$0xff]  }
  0x32   : > { %v1120_v44 = vor.u32 %v1119_v37, %v1116_v36  ;;  %v2128_v7 = vsel %vm1238_vm7, %v1244_v46, %v1246_v8  ;;  %v700_v52 = vshll.u32 %v1474_v18, 16  ;;  %v577_v3 = vrot.slane %v1474_v18, 1  ;;  %v1814_v36 = vld [vmem:[%s2347_s1 + $0x30] sm:$0xff]  }
  0x33   : > { %1632 = vmatmul.mubr.msk.bf16.vlgmr.msra.gmra.mrb[12].mxu0 %vm269_vm2, %v453_v54  ;;  %v1126_v54 = vshll.u32 %v2011_v45, 16 }
  0x34   : > { %1614 = vmatmul.mubr.msk.bf16.gmra.mrb[12].mxu1 %vm269_vm2, %v1894_v9  ;;  %1674 = vmatpush3.bf16.msra.mxu0 %v1810_v63  ;;  %v2105_v49 = vsel %vm1097_vm6, %v1111_v24, %v1120_v44  ;;  %v456_v9 = vrot.slane %v1898_v12, 1  ;;  %v702_v21 = vrot.slane %v700_v52, 2 }
  0x35   : > { %1617 = vmatprep.mubr.msk.bf16.mxu1 %vm1829_vm0, %v1828_v1  ;;  %1635 = vmatprep.mubr.msk.bf16.mxu0 %vm1829_vm0, %v1828_v1  ;;  %v1128_v61 = vrot.slane %v1126_v54, 3 }
  0x36   : > { %1717 = vmatprep.subr.bf16.mxu0 %v1828_v1  ;;  %v457_v62 = vsel %vm450_vm3, %v454_v34, %v456_v9  ;;  %v1248_v34 = vrot.slane %v2011_v45, 3  ;;  %v697_v45 = vshrl.u32 %v1474_v18, 16 }
  0x37   : > { %v1129_v63 = vor.u32 %v1128_v61, %v1125_v56 }
  0x38   : > { %v2139_v41 = vsel %vm1238_vm7, %v1246_v8, %v1248_v34 }
  0x39   : > { %v2125_v39 = vsel %vm1097_vm6, %v1120_v44, %v1129_v63 }
  0x3b   : > { %1636 = vmatmul.mubr.msk.bf16.gmra.mrb[16].mxu0 %vm269_vm2, %v455_v42 }
  0x3c   : > { %1618 = vmatmul.mubr.msk.bf16.gmra.mrb[16].mxu1 %vm269_vm2, %v1913_v22  ;;  %1639 = vmatprep.mubr.msk.bf16.mxu0 %vm1829_vm0, %v1828_v1  ;;  %v458_v22 = vrot.slane %v1905_v16, 1 }
  0x3d   : > { %1621 = vmatprep.mubr.msk.bf16.mxu1 %vm1829_vm0, %v1828_v1 }
  0x3e   : > { %v459_v14 = vsel %vm450_vm3, %v456_v9, %v458_v22 }
  0x43   : > { %1640 = vmatmul.mubr.msk.bf16.gmra.mrb[20].mxu0 %vm269_vm2, %v457_v62 }
  0x44   : > { %1622 = vmatmul.mubr.msk.bf16.gmra.mrb[20].mxu1 %vm269_vm2, %v1898_v12  ;;  %1643 = vmatprep.mubr.msk.bf16.mxu0 %vm1829_vm0, %v1828_v1  ;;  %v1475_v12 = vcombine.low %v1885_v5, %v1901_v13  ;;  %v461_v5 = vsel %vm450_vm3, %v458_v22, %v460_v19  ;;  %v699_v13 = vrot.slane %v697_v45, 1 }
  0x45   : > { %1625 = vmatprep.mubr.msk.bf16.mxu1 %vm1829_vm0, %v1828_v1 }
  0x46   : > { %v705_v55 = vshrl.u32 %v1475_v12, 16  ;;  %v708_v59 = vshll.u32 %v1475_v12, 16  ;;  %v578_v4 = vrot.slane %v1475_v12, 1  ;;  %v703_v30 = vor.u32 %v702_v21, %v699_v13 }
  0x48   : > { %v707_v25 = vrot.slane %v705_v55, 1  ;;  %v710_v20 = vrot.slane %v708_v59, 2  ;;  %v581_v37 = vsel %vm450_vm3, %v578_v4, %v580_v53  ;;  %v857_v53 = vrot.slane %v1474_v18, 2 }
  0x4a   : > { %v711_v32 = vor.u32 %v710_v20, %v707_v25 }
  0x4b   : > { %1644 = vmatmul.mubr.msk.bf16.gmra.mrb[24].mxu0 %vm269_vm2, %v459_v14 }
  0x4c   : > { %1626 = vmatmul.mubr.msk.bf16.gmra.mrb[24].mxu1 %vm269_vm2, %v1905_v16  ;;  %1647 = vmatprep.mubr.msk.bf16.mxu0 %vm1829_vm0, %v1828_v1  ;;  %v579_v16 = vsel %vm450_vm3, %v577_v3, %v578_v4  ;;  %v712_v24 = vsel %vm695_vm4, %v703_v30, %v711_v32  ;;  %v721_v42 = vsel %vm695_vm4, %v711_v32, %v1991_v31  ;;  %v1817_v31 = vld [vmem:[%s2347_s1 + $0x38] sm:$0xff]  }
  0x4d   : > { %1653 = vmatprep.mubr.msk.bf16.mxu1 %vm1829_vm0, %v1828_v1 }
  0x53   : > { %1648 = vmatmul.mubr.msk.bf16.gmra.mrb[28].mxu0 %vm269_vm2, %v461_v5 }
  0x54   : > { %1654 = vmatmul.mubr.msk.bf16.vlgmr.msra.gmra.mrb[28].mxu1 %vm269_vm2, %v579_v16  ;;  %1675 = vmatprep.mubr.msk.bf16.mxu0 %vm1829_vm0, %v1828_v1 }
  0x55   : > { %1696 = vmatpush3.bf16.msra.mxu1 %v1812_v28  ;;  %1657 = vmatprep.mubr.msk.bf16.mxu1 %vm1829_vm0, %v1828_v1 }
  0x56   : > { %1739 = vmatprep.subr.bf16.mxu1 %v1828_v1 }
  0x5b   : > { %1676 = vmatmul.mubr.msk.bf16.vlgmr.msra.gmra.mrb[32].mxu0 %vm269_vm2, %v712_v24 }
  0x5c   : > { %1658 = vmatmul.mubr.msk.bf16.gmra.mrb[32].mxu1 %vm269_vm2, %v581_v37  ;;  %1718 = vmatpush3.bf16.msra.mxu0 %v1814_v36 }
  0x5d   : > { %1661 = vmatprep.mubr.msk.bf16.mxu1 %vm1829_vm0, %v1828_v1  ;;  %1679 = vmatprep.mubr.msk.bf16.mxu0 %vm1829_vm0, %v1828_v1 }
  0x5e   : > { %1761 = vmatprep.subr.bf16.mxu0 %v1828_v1 }
  0x63   : > { %1680 = vmatmul.mubr.msk.bf16.gmra.mrb[36].mxu0 %vm269_vm2, %v721_v42 }
  0x64   : > { %1662 = vmatmul.mubr.msk.bf16.gmra.mrb[36].mxu1 %vm269_vm2, %v1976_v60  ;;  %1683 = vmatprep.mubr.msk.bf16.mxu0 %vm1829_vm0, %v1828_v1  ;;  %v858_v60 = vrot.slane %v1475_v12, 2 }
  0x65   : > { %1665 = vmatprep.mubr.msk.bf16.mxu1 %vm1829_vm0, %v1828_v1 }
  0x6b   : > { %1684 = vmatmul.mubr.msk.bf16.gmra.mrb[40].mxu0 %vm269_vm2, %v2005_v40  ;;  %v861_v40 = vsel %vm856_vm5, %v858_v60, %v860_v38 }
  0x6c   : > { %1666 = vmatmul.mubr.msk.bf16.gmra.mrb[40].mxu1 %vm269_vm2, %v1980_v0  ;;  %1687 = vmatprep.mubr.msk.bf16.mxu0 %vm1829_vm0, %v1828_v1  ;;  %v859_v0 = vsel %vm856_vm5, %v857_v53, %v858_v60 }
  0x6d   : > { %1669 = vmatprep.mubr.msk.bf16.mxu1 %vm1829_vm0, %v1828_v1 }
  0x73   : > { %1688 = vmatmul.mubr.msk.bf16.gmra.mrb[44].mxu0 %vm269_vm2, %v2016_v6 }
  0x74   : > { %1670 = vmatmul.mubr.msk.bf16.gmra.mrb[44].mxu1 %vm269_vm2, %v1994_v33  ;;  %1691 = vmatprep.mubr.msk.bf16.mxu0 %vm1829_vm0, %v1828_v1  ;;  %v1818_v33 = vld [vmem:[%s2347_s1 + $0x40] sm:$0xff]  }
  0x75   : > { %1697 = vmatprep.mubr.msk.bf16.mxu1 %vm1829_vm0, %v1828_v1 }
  0x7b   : > { %1692 = vmatmul.mubr.msk.bf16.gmra.mrb[48].mxu0 %vm269_vm2, %v2033_v57 }
  0x7c   : > { %1698 = vmatmul.mubr.msk.bf16.vlgmr.msra.gmra.mrb[48].mxu1 %vm269_vm2, %v859_v0  ;;  %1719 = vmatprep.mubr.msk.bf16.mxu0 %vm1829_vm0, %v1828_v1 }
  0x7d   : > { %1740 = vmatpush3.bf16.msra.mxu1 %v1817_v31  ;;  %1701 = vmatprep.mubr.msk.bf16.mxu1 %vm1829_vm0, %v1828_v1 }
  0x83   : > { %1720 = vmatmul.mubr.msk.bf16.vlgmr.msra.gmra.mrb[52].mxu0 %vm269_vm2, %v2024_v50 }
  0x84   : > { %1702 = vmatmul.mubr.msk.bf16.gmra.mrb[52].mxu1 %vm269_vm2, %v861_v40  ;;  %1762 = vmatpush3.bf16.msra.mxu0 %v1818_v33 }
  0x85   : > { %1705 = vmatprep.mubr.msk.bf16.mxu1 %vm1829_vm0, %v1828_v1  ;;  %1723 = vmatprep.mubr.msk.bf16.mxu0 %vm1829_vm0, %v1828_v1 }
  0x8b   : > { %1724 = vmatmul.mubr.msk.bf16.gmra.mrb[56].mxu0 %vm269_vm2, %v2036_v58 }
  0x8c   : > { %1706 = vmatmul.mubr.msk.bf16.gmra.mrb[56].mxu1 %vm269_vm2, %v2029_v47  ;;  %1727 = vmatprep.mubr.msk.bf16.mxu0 %vm1829_vm0, %v1828_v1 }
  0x8d   : > { %1709 = vmatprep.mubr.msk.bf16.mxu1 %vm1829_vm0, %v1828_v1 }
  0x93   : > { %1728 = vmatmul.mubr.msk.bf16.gmra.mrb[60].mxu0 %vm269_vm2, %v2048_v10 }
  0x94   : > { %1710 = vmatmul.mubr.msk.bf16.gmra.mrb[60].mxu1 %vm269_vm2, %v2043_v2  ;;  %1731 = vmatprep.mubr.msk.bf16.mxu0 %vm1829_vm0, %v1828_v1 }
  0x95   : > { %1713 = vmatprep.mubr.msk.bf16.mxu1 %vm1829_vm0, %v1828_v1 }
  0x9b   : > { %1732 = vmatmul.mubr.msk.bf16.gmra.mrb[64].mxu0 %vm269_vm2, %v2056_v15 }
  0x9c   : > { %1714 = vmatmul.mubr.msk.bf16.gmra.mrb[64].mxu1 %vm269_vm2, %v2051_v11  ;;  %1735 = vmatprep.mubr.msk.bf16.mxu0 %vm1829_vm0, %v1828_v1 }
  0x9d   : > { %1741 = vmatprep.mubr.msk.bf16.mxu1 %vm1829_vm0, %v1828_v1 }
  0xa3   : > { %1736 = vmatmul.mubr.msk.bf16.gmra.mrb[68].mxu0 %vm269_vm2, %v2059_v17 }
  0xa4   : > { %1742 = vmatmul.mubr.msk.bf16.vlgmr.msra.gmra.mrb[68].mxu1 %vm269_vm2, %v2067_v23  ;;  %1763 = vmatprep.mubr.msk.bf16.mxu0 %vm1829_vm0, %v1828_v1 }
  0xa5   : > { %1745 = vmatprep.mubr.msk.bf16.mxu1 %vm1829_vm0, %v1828_v1 }
  0xab   : > { %1764 = vmatmul.mubr.msk.bf16.vlgmr.msra.gmra.mrb[72].mxu0 %vm269_vm2, %v2083_v29 }
  0xac   : > { %1746 = vmatmul.mubr.msk.bf16.gmra.mrb[72].mxu1 %vm269_vm2, %v2089_v35  ;;  %1767 = vmatprep.mubr.msk.bf16.mxu0 %vm1829_vm0, %v1828_v1 }
  0xad   : > { %1749 = vmatprep.mubr.msk.bf16.mxu1 %vm1829_vm0, %v1828_v1 }
  0xb3   : > { %1768 = vmatmul.mubr.msk.bf16.gmra.mrb[76].mxu0 %vm269_vm2, %v2092_v27 }
  0xb4   : > { %1750 = vmatmul.mubr.msk.bf16.gmra.mrb[76].mxu1 %vm269_vm2, %v2100_v43  ;;  %1771 = vmatprep.mubr.msk.bf16.mxu0 %vm1829_vm0, %v1828_v1 }
  0xb5   : > { %1753 = vmatprep.mubr.msk.bf16.mxu1 %vm1829_vm0, %v1828_v1 }
  0xbb   : > { %1772 = vmatmul.mubr.msk.bf16.gmra.mrb[80].mxu0 %vm269_vm2, %v2108_v51 }
  0xbc   : > { %1754 = vmatmul.mubr.msk.bf16.gmra.mrb[80].mxu1 %vm269_vm2, %v2105_v49  ;;  %1775 = vmatprep.mubr.msk.bf16.mxu0 %vm1829_vm0, %v1828_v1 }
  0xbd   : > { %1757 = vmatprep.mubr.msk.bf16.mxu1 %vm1829_vm0, %v1828_v1 }
  0xc3   : > { %1776 = vmatmul.mubr.msk.bf16.gmra.mrb[84].mxu0 %vm269_vm2, %v2128_v7 }
  0xc4   : > { %1758 = vmatmul.mubr.msk.bf16.gmra.mrb[84].mxu1 %vm269_vm2, %v2125_v39  ;;  %1779 = vmatprep.mubr.msk.bf16.mxu0 %vm1829_vm0, %v1828_v1 }
  0xcb   : > { %1780 = vmatmul.mubr.msk.bf16.gmra.mrb[88].mxu0 %vm269_vm2, %v2139_v41 }
  0xee   : > { %v319_v48 = vpop.f32.mrb[0].mxu0 }
  0xef   : > { %v1589_v38 = vpop.f32.mrb[1].mxu0  ;;  %v343_v6 = vpop.f32.mrb[0].mxu1 }
  0xf0   : > { %v322_v50 = vpop.f32.mrb[2].mxu0  ;;  %v1601_v47 = vpop.f32.mrb[1].mxu1 }
  0xf1   : > { %v1590_v57 = vpop.f32.mrb[3].mxu0  ;;  %v346_v58 = vpop.f32.mrb[2].mxu1 }
  0xf2   : > { %v1602_v2 = vpop.f32.mrb[3].mxu1 }
  0xf6   : > { %v327_v10 = vpop.f32.mrb[4].mxu0 }
  0xf7   : > { %v1593_v11 = vpop.f32.mrb[5].mxu0  ;;  %v351_v15 = vpop.f32.mrb[4].mxu1 }
  0xf8   : > { %v330_v17 = vpop.f32.mrb[6].mxu0  ;;  %v1605_v23 = vpop.f32.mrb[5].mxu1 }
  0xf9   : > { %v1594_v29 = vpop.f32.mrb[7].mxu0  ;;  %v354_v35 = vpop.f32.mrb[6].mxu1 }
  0xfa   : > { %v1606_v27 = vpop.f32.mrb[7].mxu1 }
  0xfe   : > { %v335_v1 = vpop.f32.mrb[8].mxu0 }
  0xff   : > { %v408_v43 = vpop.f32.mrb[8].mxu1  ;;  %v1597_v44 = vpop.f32.mrb[9].mxu0 }
 0x100   : > { %v409_v46 = vadd.f32 %v408_v43, %v319_v48  ;;  %v1611_v49 = vpop.f32.mrb[9].mxu1  ;;  %v338_v51 = vpop.f32.mrb[10].mxu0 }
 0x101   : > { %v411_v9 = vpop.f32.mrb[10].mxu1  ;;  %v1598_v26 = vpop.f32.mrb[11].mxu0 }
 0x102   : > { %v412_v54 = vadd.f32 %v411_v9, %v322_v50  ;;  %v1612_v56 = vpop.f32.mrb[11].mxu1 }
 0x106   : > { %v517_v61 = vpop.f32.mrb[12].mxu0 }
 0x107   : > { %v416_v62 = vpop.f32.mrb[12].mxu1  ;;  %v556_v63 = vadd.f32 %v517_v61, %v409_v46  ;;  %v1633_v8 = vpop.f32.mrb[13].mxu0 }
 0x108   : > { %v417_v39 = vadd.f32 %v416_v62, %v327_v10  ;;  %v1615_v7 = vpop.f32.mrb[13].mxu1  ;;  %v520_v22 = vpop.f32.mrb[14].mxu0 }
 0x109   : > { %v419_v34 = vpop.f32.mrb[14].mxu1  ;;  %v557_v41 = vadd.f32 %v520_v22, %v412_v54  ;;  %v1634_v14 = vpop.f32.mrb[15].mxu0 }
 0x10a   : > { %v420_v18 = vadd.f32 %v419_v34, %v330_v17  ;;  %v1616_v12 = vpop.f32.mrb[15].mxu1 }
 0x10e   : > { %v525_v19 = vpop.f32.mrb[16].mxu0 }
 0x10f   : > { %v424_v45 = vpop.f32.mrb[16].mxu1  ;;  %v558_v52 = vadd.f32 %v525_v19, %v417_v39  ;;  %v1637_v55 = vpop.f32.mrb[17].mxu0 }
 0x110   : > { %v425_v59 = vadd.f32 %v424_v45, %v335_v1  ;;  %v1619_v3 = vpop.f32.mrb[17].mxu1  ;;  %v528_v4 = vpop.f32.mrb[18].mxu0 }
 0x111   : > { %v427_v5 = vpop.f32.mrb[18].mxu1  ;;  %v559_v13 = vadd.f32 %v528_v4, %v420_v18  ;;  %v1638_v21 = vpop.f32.mrb[19].mxu0 }
 0x112   : > { %v428_v25 = vadd.f32 %v427_v5, %v338_v51  ;;  %v1620_v20 = vpop.f32.mrb[19].mxu1 }
 0x116   : > { %v533_v16 = vpop.f32.mrb[20].mxu0 }
 0x117   : > { %v432_v28 = vpop.f32.mrb[20].mxu1  ;;  %v560_v30 = vadd.f32 %v533_v16, %v425_v59  ;;  %v1641_v32 = vpop.f32.mrb[21].mxu0 }
 0x118   : > { %v433_v24 = vadd.f32 %v432_v28, %v343_v6  ;;  %v1623_v36 = vpop.f32.mrb[21].mxu1  ;;  %v536_v37 = vpop.f32.mrb[22].mxu0 }
 0x119   : > { %v435_v42 = vpop.f32.mrb[22].mxu1  ;;  %v561_v53 = vadd.f32 %v536_v37, %v428_v25  ;;  %v1642_v60 = vpop.f32.mrb[23].mxu0 }
 0x11a   : > { %v436_v0 = vadd.f32 %v435_v42, %v346_v58  ;;  %v1624_v31 = vpop.f32.mrb[23].mxu1 }
 0x11e   : > { %v541_v33 = vpop.f32.mrb[24].mxu0 }
 0x11f   : > { %v440_v40 = vpop.f32.mrb[24].mxu1  ;;  %v562_v48 = vadd.f32 %v541_v33, %v433_v24  ;;  %v1645_v38 = vpop.f32.mrb[25].mxu0 }
 0x120   : > { %v441_v50 = vadd.f32 %v440_v40, %v351_v15  ;;  %v1627_v47 = vpop.f32.mrb[25].mxu1  ;;  %v544_v57 = vpop.f32.mrb[26].mxu0 }
 0x121   : > { %v443_v2 = vpop.f32.mrb[26].mxu1  ;;  %v563_v10 = vadd.f32 %v544_v57, %v436_v0  ;;  %v1646_v11 = vpop.f32.mrb[27].mxu0 }
 0x122   : > { %v444_v17 = vadd.f32 %v443_v2, %v354_v35  ;;  %v1628_v23 = vpop.f32.mrb[27].mxu1 }
 0x126   : > { %v549_v6 = vpop.f32.mrb[28].mxu0 }
 0x127   : > { %v564_v29 = vadd.f32 %v549_v6, %v441_v50  ;;  %v643_v27 = vpop.f32.mrb[28].mxu1  ;;  %v1649_v1 = vpop.f32.mrb[29].mxu0 }
 0x128   : > { %v682_v43 = vadd.f32 %v643_v27, %v556_v63  ;;  %v1655_v44 = vpop.f32.mrb[29].mxu1  ;;  %v552_v58 = vpop.f32.mrb[30].mxu0 }
 0x129   : > { %v565_v46 = vadd.f32 %v552_v58, %v444_v17  ;;  %v646_v49 = vpop.f32.mrb[30].mxu1  ;;  %v1650_v51 = vpop.f32.mrb[31].mxu0 }
 0x12a   : > { %v683_v9 = vadd.f32 %v646_v49, %v557_v41  ;;  %v1656_v26 = vpop.f32.mrb[31].mxu1 }
 0x12e   : > { %v804_v15 = vpop.f32.mrb[32].mxu0 }
 0x12f   : > { %v651_v54 = vpop.f32.mrb[32].mxu1  ;;  %v843_v56 = vadd.f32 %v804_v15, %v682_v43  ;;  %v1677_v61 = vpop.f32.mrb[33].mxu0 }
 0x130   : > { %v684_v62 = vadd.f32 %v651_v54, %v558_v52  ;;  %v1659_v8 = vpop.f32.mrb[33].mxu1  ;;  %v807_v35 = vpop.f32.mrb[34].mxu0 }
 0x131   : > { %v654_v39 = vpop.f32.mrb[34].mxu1  ;;  %v844_v7 = vadd.f32 %v807_v35, %v683_v9  ;;  %v1678_v22 = vpop.f32.mrb[35].mxu0 }
 0x132   : > { %v685_v34 = vadd.f32 %v654_v39, %v559_v13  ;;  %v1660_v14 = vpop.f32.mrb[35].mxu1 }
 0x136   : > { %v812_v63 = vpop.f32.mrb[36].mxu0 }
 0x137   : > { %v659_v18 = vpop.f32.mrb[36].mxu1  ;;  %v845_v12 = vadd.f32 %v812_v63, %v684_v62  ;;  %v1681_v19 = vpop.f32.mrb[37].mxu0 }
 0x138   : > { %v686_v45 = vadd.f32 %v659_v18, %v560_v30  ;;  %v1663_v55 = vpop.f32.mrb[37].mxu1  ;;  %v815_v41 = vpop.f32.mrb[38].mxu0 }
 0x139   : > { %v662_v59 = vpop.f32.mrb[38].mxu1  ;;  %v846_v3 = vadd.f32 %v815_v41, %v685_v34  ;;  %v1682_v4 = vpop.f32.mrb[39].mxu0 }
 0x13a   : > { %v687_v5 = vadd.f32 %v662_v59, %v561_v53  ;;  %v1664_v21 = vpop.f32.mrb[39].mxu1 }
 0x13e   : > { %v820_v52 = vpop.f32.mrb[40].mxu0 }
 0x13f   : > { %v667_v25 = vpop.f32.mrb[40].mxu1  ;;  %v847_v20 = vadd.f32 %v820_v52, %v686_v45  ;;  %v1685_v16 = vpop.f32.mrb[41].mxu0 }
 0x140   : > { %v688_v28 = vadd.f32 %v667_v25, %v562_v48  ;;  %v1667_v32 = vpop.f32.mrb[41].mxu1  ;;  %v823_v13 = vpop.f32.mrb[42].mxu0 }
 0x141   : > { %v670_v24 = vpop.f32.mrb[42].mxu1  ;;  %v848_v36 = vadd.f32 %v823_v13, %v687_v5  ;;  %v1686_v37 = vpop.f32.mrb[43].mxu0 }
 0x142   : > { %v689_v42 = vadd.f32 %v670_v24, %v563_v10  ;;  %v1668_v60 = vpop.f32.mrb[43].mxu1 }
 0x146   : > { %v828_v30 = vpop.f32.mrb[44].mxu0 }
 0x147   : > { %v675_v0 = vpop.f32.mrb[44].mxu1  ;;  %v849_v31 = vadd.f32 %v828_v30, %v688_v28  ;;  %v1689_v33 = vpop.f32.mrb[45].mxu0 }
 0x148   : > { %v690_v40 = vadd.f32 %v675_v0, %v564_v29  ;;  %v1671_v38 = vpop.f32.mrb[45].mxu1  ;;  %v831_v53 = vpop.f32.mrb[46].mxu0 }
 0x149   : > { %v678_v50 = vpop.f32.mrb[46].mxu1  ;;  %v850_v47 = vadd.f32 %v831_v53, %v689_v42  ;;  %v1690_v57 = vpop.f32.mrb[47].mxu0 }
 0x14a   : > { %v691_v2 = vadd.f32 %v678_v50, %v565_v46  ;;  %v1672_v11 = vpop.f32.mrb[47].mxu1 }
 0x14e   : > { %v836_v48 = vpop.f32.mrb[48].mxu0 }
 0x14f   : > { %v851_v17 = vadd.f32 %v836_v48, %v690_v40  ;;  %v923_v23 = vpop.f32.mrb[48].mxu1  ;;  %v1693_v6 = vpop.f32.mrb[49].mxu0 }
 0x150   : > { %v962_v27 = vadd.f32 %v923_v23, %v843_v56  ;;  %v1699_v1 = vpop.f32.mrb[49].mxu1  ;;  %v839_v10 = vpop.f32.mrb[50].mxu0 }
 0x151   : > { %v852_v43 = vadd.f32 %v839_v10, %v691_v2  ;;  %v926_v44 = vpop.f32.mrb[50].mxu1  ;;  %v1694_v58 = vpop.f32.mrb[51].mxu0 }
 0x152   : > { %v963_v49 = vadd.f32 %v926_v44, %v844_v7  ;;  %v1700_v51 = vpop.f32.mrb[51].mxu1 }
 0x156   : > { %v1045_v29 = vpop.f32.mrb[52].mxu0 }
 0x157   : > { %v931_v9 = vpop.f32.mrb[52].mxu1  ;;  %v1084_v26 = vadd.f32 %v1045_v29, %v962_v27  ;;  %v1721_v15 = vpop.f32.mrb[53].mxu0 }
 0x158   : > { %v964_v54 = vadd.f32 %v931_v9, %v845_v12  ;;  %v1703_v61 = vpop.f32.mrb[53].mxu1  ;;  %v1048_v46 = vpop.f32.mrb[54].mxu0 }
 0x159   : > { %v934_v62 = vpop.f32.mrb[54].mxu1  ;;  %v1085_v8 = vadd.f32 %v1048_v46, %v963_v49  ;;  %v1722_v35 = vpop.f32.mrb[55].mxu0 }
 0x15a   : > { %v965_v39 = vadd.f32 %v934_v62, %v846_v3  ;;  %v1704_v22 = vpop.f32.mrb[55].mxu1 }
 0x15e   : > { %v1053_v56 = vpop.f32.mrb[56].mxu0 }
 0x15f   : > { %v939_v34 = vpop.f32.mrb[56].mxu1  ;;  %v1086_v14 = vadd.f32 %v1053_v56, %v964_v54  ;;  %v1725_v63 = vpop.f32.mrb[57].mxu0 }
 0x160   : > { %v966_v18 = vadd.f32 %v939_v34, %v847_v20  ;;  %v1707_v19 = vpop.f32.mrb[57].mxu1  ;;  %v1056_v7 = vpop.f32.mrb[58].mxu0 }
 0x161   : > { %v942_v45 = vpop.f32.mrb[58].mxu1  ;;  %v1087_v55 = vadd.f32 %v1056_v7, %v965_v39  ;;  %v1726_v41 = vpop.f32.mrb[59].mxu0 }
 0x162   : > { %v967_v59 = vadd.f32 %v942_v45, %v848_v36  ;;  %v1708_v4 = vpop.f32.mrb[59].mxu1 }
 0x166   : > { %v1061_v12 = vpop.f32.mrb[60].mxu0 }
 0x167   : > { %v947_v5 = vpop.f32.mrb[60].mxu1  ;;  %v1088_v21 = vadd.f32 %v1061_v12, %v966_v18  ;;  %v1729_v52 = vpop.f32.mrb[61].mxu0 }
 0x168   : > { %v968_v25 = vadd.f32 %v947_v5, %v849_v31  ;;  %v1711_v16 = vpop.f32.mrb[61].mxu1  ;;  %v1064_v3 = vpop.f32.mrb[62].mxu0 }
 0x169   : > { %v950_v28 = vpop.f32.mrb[62].mxu1  ;;  %v1089_v32 = vadd.f32 %v1064_v3, %v967_v59  ;;  %v1730_v13 = vpop.f32.mrb[63].mxu0 }
 0x16a   : > { %v969_v24 = vadd.f32 %v950_v28, %v850_v47  ;;  %v1712_v37 = vpop.f32.mrb[63].mxu1 }
 0x16e   : > { %v1069_v20 = vpop.f32.mrb[64].mxu0 }
 0x16f   : > { %v955_v42 = vpop.f32.mrb[64].mxu1  ;;  %v1090_v60 = vadd.f32 %v1069_v20, %v968_v25  ;;  %v1733_v30 = vpop.f32.mrb[65].mxu0 }
 0x170   : > { %v970_v0 = vadd.f32 %v955_v42, %v851_v17  ;;  %v1715_v33 = vpop.f32.mrb[65].mxu1  ;;  %v1072_v36 = vpop.f32.mrb[66].mxu0 }
 0x171   : > { %v958_v40 = vpop.f32.mrb[66].mxu1  ;;  %v2293_v38 = vadd.f32 %v1072_v36, %v969_v24  ;;  %v1734_v53 = vpop.f32.mrb[67].mxu0 }
 0x172   : > { %v971_v31 = vadd.f32 %v958_v40, %v852_v43  ;;  %v1716_v50 = vpop.f32.mrb[67].mxu1  ;;  %v2303_v43 = vld [vmem:[%s2348_s2] ss:$0 sm:$0xff] }
 0x176   : > { %v1077_v57 = vpop.f32.mrb[68].mxu0 }
 0x177   : > { %v2295_v2 = vadd.f32 %v1077_v57, %v970_v0  ;;  %v1186_v11 = vpop.f32.mrb[68].mxu1  ;;  %v1737_v47 = vpop.f32.mrb[69].mxu0 }
 0x178   : > { %v1225_v48 = vadd.f32 %v1186_v11, %v1084_v26  ;;  %v1743_v23 = vpop.f32.mrb[69].mxu1  ;;  %v1080_v6 = vpop.f32.mrb[70].mxu0 }
 0x179   : > { %v2297_v27 = vadd.f32 %v1080_v6, %v971_v31  ;;  %v1189_v17 = vpop.f32.mrb[70].mxu1  ;;  %v1738_v1 = vpop.f32.mrb[71].mxu0 }
 0x17a   : > { %v1226_v10 = vadd.f32 %v1189_v17, %v1085_v8  ;;  %v1744_v44 = vpop.f32.mrb[71].mxu1 }
 0x17e   : > { %v1305_v58 = vpop.f32.mrb[72].mxu0 }
 0x17f   : > { %v1194_v49 = vpop.f32.mrb[72].mxu1  ;;  %v1344_v51 = vadd.f32 %v1305_v58, %v1225_v48  ;;  %v1765_v29 = vpop.f32.mrb[73].mxu0 }
 0x180   : > { %v1227_v9 = vadd.f32 %v1194_v49, %v1086_v14  ;;  %v1747_v26 = vpop.f32.mrb[73].mxu1  ;;  %v1308_v15 = vpop.f32.mrb[74].mxu0 }
 0x181   : > { %v1361_v54 = vadd.f32 %v2303_v43, %v1344_v51  ;;  %v1197_v61 = vpop.f32.mrb[74].mxu1  ;;  %v1345_v46 = vadd.f32 %v1308_v15, %v1226_v10  ;;  %v1766_v62 = vpop.f32.mrb[75].mxu0 }
 0x182   : > { %v1228_v8 = vadd.f32 %v1197_v61, %v1087_v55  ;;  %v1748_v35 = vpop.f32.mrb[75].mxu1 }
 0x183   : > { %1372 = vst.msk [vmem:[%s2308_s16] sm:$0xff] %vm1371_vm8, %v1361_v54  ;;  %v1362_v39 = vadd.f32 %v2303_v43, %v1345_v46 }
 0x185   : > { %1373 = vst.msk [vmem:[%s2308_s16 + $0x8] sm:$0xff] %vm1371_vm8, %v1362_v39 }
 0x186   : > { %v1313_v22 = vpop.f32.mrb[76].mxu0 }
 0x187   : > { %v1202_v56 = vpop.f32.mrb[76].mxu1  ;;  %v1346_v34 = vadd.f32 %v1313_v22, %v1227_v9  ;;  %v1769_v14 = vpop.f32.mrb[77].mxu0 }
 0x188   : > { %v1229_v63 = vadd.f32 %v1202_v56, %v1088_v21  ;;  %v1751_v18 = vpop.f32.mrb[77].mxu1  ;;  %v1316_v19 = vpop.f32.mrb[78].mxu0 }
 0x189   : > { %v1363_v7 = vadd.f32 %v2303_v43, %v1346_v34  ;;  %v1205_v45 = vpop.f32.mrb[78].mxu1  ;;  %v1347_v55 = vadd.f32 %v1316_v19, %v1228_v8  ;;  %v1770_v41 = vpop.f32.mrb[79].mxu0 }
 0x18a   : > { %v1230_v59 = vadd.f32 %v1205_v45, %v1089_v32  ;;  %v1752_v4 = vpop.f32.mrb[79].mxu1 }
 0x18b   : > { %1374 = vst.msk [vmem:[%s2308_s16 + $0x10] sm:$0xff] %vm1371_vm8, %v1363_v7  ;;  %v1364_v12 = vadd.f32 %v2303_v43, %v1347_v55 }
 0x18d   : > { %1375 = vst.msk [vmem:[%s2308_s16 + $0x18] sm:$0xff] %vm1371_vm8, %v1364_v12 }
 0x18e   : > { %v1321_v5 = vpop.f32.mrb[80].mxu0 }
 0x18f   : > { %v1210_v52 = vpop.f32.mrb[80].mxu1  ;;  %v1348_v21 = vadd.f32 %v1321_v5, %v1229_v63  ;;  %v1773_v25 = vpop.f32.mrb[81].mxu0 }
 0x190   : > { %v1231_v16 = vadd.f32 %v1210_v52, %v1090_v60  ;;  %v1755_v3 = vpop.f32.mrb[81].mxu1  ;;  %v1324_v28 = vpop.f32.mrb[82].mxu0 }
 0x191   : > { %v1365_v13 = vadd.f32 %v2303_v43, %v1348_v21  ;;  %v1213_v24 = vpop.f32.mrb[82].mxu1  ;;  %v1349_v32 = vadd.f32 %v1324_v28, %v1230_v59  ;;  %v1774_v37 = vpop.f32.mrb[83].mxu0 }
 0x192   : > { %v1232_v20 = vadd.f32 %v1213_v24, %v2293_v38  ;;  %v1756_v42 = vpop.f32.mrb[83].mxu1 }
 0x193   : > { %1376 = vst.msk [vmem:[%s2308_s16 + $0x20] sm:$0xff] %vm1371_vm8, %v1365_v13  ;;  %v1366_v30 = vadd.f32 %v2303_v43, %v1349_v32 }
 0x195   : > { %1377 = vst.msk [vmem:[%s2308_s16 + $0x28] sm:$0xff] %vm1371_vm8, %v1366_v30 }
 0x196   : > { %v1329_v0 = vpop.f32.mrb[84].mxu0 }
 0x197   : > { %v1218_v60 = vpop.f32.mrb[84].mxu1  ;;  %v1350_v33 = vadd.f32 %v1329_v0, %v1231_v16  ;;  %v1777_v36 = vpop.f32.mrb[85].mxu0 }
 0x198   : > { %v1233_v40 = vadd.f32 %v1218_v60, %v2295_v2  ;;  %v1759_v53 = vpop.f32.mrb[85].mxu1  ;;  %v1332_v31 = vpop.f32.mrb[86].mxu0 }
 0x199   : > { %v1367_v50 = vadd.f32 %v2303_v43, %v1350_v33  ;;  %v1221_v38 = vpop.f32.mrb[86].mxu1  ;;  %v1351_v57 = vadd.f32 %v1332_v31, %v1232_v20  ;;  %v1778_v11 = vpop.f32.mrb[87].mxu0 }
 0x19a   : > { %v1234_v47 = vadd.f32 %v1221_v38, %v2297_v27  ;;  %v1760_v48 = vpop.f32.mrb[87].mxu1 }
 0x19b   : > { %1378 = vst.msk [vmem:[%s2308_s16 + $0x30] sm:$0xff] %vm1371_vm8, %v1367_v50  ;;  %v1368_v23 = vadd.f32 %v2303_v43, %v1351_v57 }
 0x19d   : > { %1379 = vst.msk [vmem:[%s2308_s16 + $0x38] sm:$0xff] %vm1371_vm8, %v1368_v23 }
 0x19e   : > { %v1337_v6 = vpop.f32.mrb[88].mxu0 }
 0x19f   : > { %v1352_v2 = vadd.f32 %v1337_v6, %v1233_v40  ;;  %v1781_v17 = vpop.f32.mrb[89].mxu0 }
 0x1a0   : > { %v1340_v1 = vpop.f32.mrb[90].mxu0 }
 0x1a1   : > { %v1369_v10 = vadd.f32 %v2303_v43, %v1352_v2  ;;  %v1353_v44 = vadd.f32 %v1340_v1, %v1234_v47  ;;  %v1782_v58 = vpop.f32.mrb[91].mxu0 }
 0x1a3   : > { %1380 = vst.msk [vmem:[%s2308_s16 + $0x40] sm:$0xff] %vm1371_vm8, %v1369_v10  ;;  %v1370_v49 = vadd.f32 %v2303_v43, %v1353_v44 }
 0x1a5   : > { %1381 = vst.msk [vmem:[%s2308_s16 + $0x48] sm:$0xff] %vm1371_vm8, %v1370_v49 }
 0x1a6 PF: > { %s13_s12 = sadd.s32 1, %s1826_s12  }
 0x1a7   : > { %p10_p4 = scmp.ge.s32.totalorder %s13_s12, 4  }
 0x1a9   :  { %12 = sbr.rel (!%p10_p4) target bundleno = 1 (0x1), region = 70 }

</bundles_post_ra>
